<compile_context>
chip_gen: v7x
topology: tpu7x:2x2x1
jax: 0.10.0
libtpu: 0.0.40
codegen_flags: <defaults>
</compile_context>

<pallas_src>
import functools

import jax
import jax.numpy as jnp
from jax.experimental import pallas as pl
from jax.experimental.pallas import tpu as pltpu

f32 = jnp.float32


# --------------------------------------------------------------------------
# Kernel
# --------------------------------------------------------------------------
def hrnn_cell_kernel(x_ref, s_ref, wu_ref, bu_ref, wo_ref, bo_ref,
                     wx_ref, wh_ref, bio_ref, out_ref, *, rnn_dim, union_dim):
    RD, UD = rnn_dim, union_dim
    HW = 2 * RD + UD          # width of the hidden half of the state slab
    W2 = 2 * RD               # width of the paired io hidden/cell blocks

    state = s_ref[...]                  # (B, 2*HW) = [h1|h2|hu|c1|c2|cu]
    h_all = state[:, 0:HW]              # [h1 | h2 | hu]
    c12 = state[:, HW:HW + W2]          # [c1 | c2]
    cu = state[:, HW + W2:2 * HW]       # cu

    # ---- union LSTM: single MXU matmul over the whole hidden slab ----------
    gu = (jnp.dot(h_all, wu_ref[...], preferred_element_type=jnp.float32)
          + bu_ref[...])                                        # (B, 4*UD)
    iu = jax.nn.sigmoid(gu[:, 0 * UD:1 * UD])
    fu = jax.nn.sigmoid(gu[:, 1 * UD:2 * UD])
    ggu = jnp.tanh(gu[:, 2 * UD:3 * UD])
    ou = jax.nn.sigmoid(gu[:, 3 * UD:4 * UD])
    cu_new = fu * cu + iu * ggu
    hu_new = ou * jnp.tanh(cu_new)

    # ---- union_out Linear -> [rnn1_state | rnn2_state] ---------------------
    uh = (jnp.dot(hu_new, wo_ref[...], preferred_element_type=jnp.float32)
          + bo_ref[...])                                        # (B, 2*RD)

    # ---- io_rnn1 + io_rnn2 gates fused (gate-blocked columns) --------------
    # column layout: [i1|i2 | f1|f2 | g1|g2 | o1|o2], each block RD wide.
    gio = (jnp.dot(x_ref[...], wx_ref[...], preferred_element_type=jnp.float32)
           + jnp.dot(uh, wh_ref[...], preferred_element_type=jnp.float32)
           + bio_ref[...])                                      # (B, 8*RD)
    ii = jax.nn.sigmoid(gio[:, 0 * W2:1 * W2])
    ff = jax.nn.sigmoid(gio[:, 1 * W2:2 * W2])
    gg = jnp.tanh(gio[:, 2 * W2:3 * W2])
    oo = jax.nn.sigmoid(gio[:, 3 * W2:4 * W2])
    c12_new = ff * c12 + ii * gg          # [c1' | c2']
    h12_new = oo * jnp.tanh(c12_new)      # [h1' | h2']

    # ---- single lane-contiguous output slab: [h1'|h2'|hu'|c1'|c2'|cu'] -----
    out_ref[:, 0:W2] = h12_new
    out_ref[:, W2:HW] = hu_new
    out_ref[:, HW:HW + W2] = c12_new
    out_ref[:, HW + W2:2 * HW] = cu_new


# --------------------------------------------------------------------------
# One-time parameter packing (hoisted out of the per-step path)
# --------------------------------------------------------------------------
def pack_hrnn_params(p, rnn_dim, union_dim):
    """Pack torch-convention weights into the kernel layout. Call once."""
    RD = rnn_dim
    del union_dim  # layout derived from shapes

    # union LSTM: stacked [W_ih^T ; W_hh^T] acting on [h1|h2|hu]
    w_u = jnp.concatenate([p["union_w_ih"].T, p["union_w_hh"].T],
                          axis=0).astype(f32)                    # (2RD+UD, 4UD)
    b_u = (p["union_b_ih"] + p["union_b_hh"]).reshape(1, -1).astype(f32)

    # union_out Linear
    w_o = p["out_w"].T.astype(f32)                               # (UD, 2RD)
    b_o = p["out_b"].reshape(1, -1).astype(f32)

    # io RNNs: block-diagonal weights with gate-blocked column order
    wih1 = p["rnn1_w_ih"].T.astype(f32)   # (D1, 4RD)
    wih2 = p["rnn2_w_ih"].T.astype(f32)   # (D2, 4RD)
    whh1 = p["rnn1_w_hh"].T.astype(f32)   # (RD, 4RD)
    whh2 = p["rnn2_w_hh"].T.astype(f32)   # (RD, 4RD)
    b1 = (p["rnn1_b_ih"] + p["rnn1_b_hh"]).astype(f32)
    b2 = (p["rnn2_b_ih"] + p["rnn2_b_hh"]).astype(f32)
    D1, D2 = wih1.shape[0], wih2.shape[0]

    wx_blocks, wh_blocks, b_blocks = [], [], []
    for g in range(4):                     # gate order: i, f, g, o
        sl = slice(g * RD, (g + 1) * RD)
        # column block for gate g of rnn1, then of rnn2
        wx_blocks.append(jnp.concatenate(
            [wih1[:, sl], jnp.zeros((D2, RD), f32)], axis=0))
        wx_blocks.append(jnp.concatenate(
            [jnp.zeros((D1, RD), f32), wih2[:, sl]], axis=0))
        wh_blocks.append(jnp.concatenate(
            [whh1[:, sl], jnp.zeros((RD, RD), f32)], axis=0))
        wh_blocks.append(jnp.concatenate(
            [jnp.zeros((RD, RD), f32), whh2[:, sl]], axis=0))
        b_blocks.append(b1[sl])
        b_blocks.append(b2[sl])

    w_x = jnp.concatenate(wx_blocks, axis=1)                     # (D1+D2, 8RD)
    w_h = jnp.concatenate(wh_blocks, axis=1)                     # (2RD,  8RD)
    b_io = jnp.concatenate(b_blocks).reshape(1, -1)              # (1, 8RD)

    return {"w_u": w_u, "b_u": b_u, "w_o": w_o, "b_o": b_o,
            "w_x": w_x, "w_h": w_h, "b_io": b_io}


# --------------------------------------------------------------------------
# State slab helpers + step wrapper
# --------------------------------------------------------------------------
def pack_state(states):
    h1, c1, h2, c2, hu, cu = states
    return jnp.concatenate([h1, h2, hu, c1, c2, cu], axis=-1)


def unpack_state(slab, rnn_dim, union_dim):
    RD, UD = rnn_dim, union_dim
    HW = 2 * RD + UD
    h1 = slab[:, 0:RD]
    h2 = slab[:, RD:2 * RD]
    hu = slab[:, 2 * RD:HW]
    c1 = slab[:, HW:HW + RD]
    c2 = slab[:, HW + RD:HW + 2 * RD]
    cu = slab[:, HW + 2 * RD:2 * HW]
    return h1, c1, h2, c2, hu, cu


@functools.partial(jax.jit, static_argnames=("rnn_dim", "union_dim"))
def hrnn_cell_step(x_slab, state_slab, packed, *, rnn_dim, union_dim):
    """One cell step on packed slabs. Returns the new state slab."""
    B = x_slab.shape[0]
    HW = 2 * rnn_dim + union_dim
    kernel = functools.partial(hrnn_cell_kernel,
                               rnn_dim=rnn_dim, union_dim=union_dim)
    vmem = pl.BlockSpec(memory_space=pltpu.MemorySpace.VMEM)
    inputs = (x_slab, state_slab,
              packed["w_u"], packed["b_u"],
              packed["w_o"], packed["b_o"],
              packed["w_x"], packed["w_h"], packed["b_io"])
    return pl.pallas_call(
        kernel,
        out_shape=jax.ShapeDtypeStruct((B, 2 * HW), f32),
        in_specs=[vmem] * len(inputs),
        out_specs=vmem,
    )(*inputs)


def hrnn_cell_forward(xv, xk, states, packed, *, rnn_dim, union_dim):
    """Module-style API: takes separate tensors, returns 6 separate tensors."""
    x_slab = jnp.concatenate([xv, xk], axis=-1).astype(f32)
    s_slab = pack_state(states).astype(f32)
    out = hrnn_cell_step(x_slab, s_slab, packed,
                         rnn_dim=rnn_dim, union_dim=union_dim)
    return unpack_state(out, rnn_dim, union_dim)


# ---------------- pure-JAX reference (mirrors the PyTorch module) ----------
def _lstm_cell_ref(x, h, c, w_ih, w_hh, b_ih, b_hh):
    gates = x @ w_ih.T + b_ih + h @ w_hh.T + b_hh
    H = h.shape[1]
    i = jax.nn.sigmoid(gates[:, 0 * H:1 * H])
    f = jax.nn.sigmoid(gates[:, 1 * H:2 * H])
    g = jnp.tanh(gates[:, 2 * H:3 * H])
    o = jax.nn.sigmoid(gates[:, 3 * H:4 * H])
    c_new = f * c + i * g
    h_new = o * jnp.tanh(c_new)
    return h_new, c_new


def hrnn_cell_reference(xv, xk, states, p, rnn_dim):
    h1, c1, h2, c2, hu, cu = states
    inputs_u = jnp.concatenate((h1, h2), axis=-1)
    hu_n, cu_n = _lstm_cell_ref(inputs_u, hu, cu,
                                p["union_w_ih"], p["union_w_hh"],
                                p["union_b_ih"], p["union_b_hh"])
    union_hidden = hu_n @ p["out_w"].T + p["out_b"]
    rnn1_state = union_hidden[:, :rnn_dim]
    rnn2_state = union_hidden[:, rnn_dim:]
    h1_n, c1_n = _lstm_cell_ref(xv, rnn1_state, c1,
                                p["rnn1_w_ih"], p["rnn1_w_hh"],
                                p["rnn1_b_ih"], p["rnn1_b_hh"])
    h2_n, c2_n = _lstm_cell_ref(xk, rnn2_state, c2,
                                p["rnn2_w_ih"], p["rnn2_w_hh"],
                                p["rnn2_b_ih"], p["rnn2_b_hh"])
    return h1_n, c1_n, h2_n, c2_n, hu_n, cu_n


if __name__ == "__main__":
    # Small shapes consistent with the module.
    B = 8
    input_dim1 = 16
    input_dim2 = 12
    rnn_dim = 32
    union_dim = 16

    key = jax.random.PRNGKey(0)
    ks = jax.random.split(key, 16)

    def rnd(k, shape, scale=0.1):
        return (scale * jax.random.normal(k, shape)).astype(f32)

    # Deterministic synthetic parameters (torch LSTMCell / Linear shapes).
    params = {
        "rnn1_w_ih": rnd(ks[0], (4 * rnn_dim, input_dim1)),
        "rnn1_w_hh": rnd(ks[1], (4 * rnn_dim, rnn_dim)),
        "rnn1_b_ih": rnd(ks[2], (4 * rnn_dim,)),
        "rnn1_b_hh": rnd(ks[3], (4 * rnn_dim,)),
        "rnn2_w_ih": rnd(ks[4], (4 * rnn_dim, input_dim2)),
        "rnn2_w_hh": rnd(ks[5], (4 * rnn_dim, rnn_dim)),
        "rnn2_b_ih": rnd(ks[6], (4 * rnn_dim,)),
        "rnn2_b_hh": rnd(ks[7], (4 * rnn_dim,)),
        "union_w_ih": rnd(ks[8], (4 * union_dim, 2 * rnn_dim)),
        "union_w_hh": rnd(ks[9], (4 * union_dim, union_dim)),
        "union_b_ih": rnd(ks[10], (4 * union_dim,)),
        "union_b_hh": rnd(ks[11], (4 * union_dim,)),
        "out_w": rnd(ks[12], (2 * rnn_dim, union_dim)),
        "out_b": rnd(ks[13], (2 * rnn_dim,)),
    }

    xv = rnd(ks[14], (B, input_dim1), scale=1.0)
    xk = rnd(ks[15], (B, input_dim2), scale=1.0)

    # states=None path of the module: all-zero initial states.
    states = (
        jnp.zeros((B, rnn_dim), f32), jnp.zeros((B, rnn_dim), f32),
        jnp.zeros((B, rnn_dim), f32), jnp.zeros((B, rnn_dim), f32),
        jnp.zeros((B, union_dim), f32), jnp.zeros((B, union_dim), f32),
    )

    # Pack parameters ONCE (offline) into the kernel layout.
    packed = jax.tree_util.tree_map(jax.block_until_ready,
                                    pack_hrnn_params(params, rnn_dim, union_dim))

    outs = hrnn_cell_forward(xv, xk, states, packed,
                             rnn_dim=rnn_dim, union_dim=union_dim)
    outs = jax.block_until_ready(outs)

    refs = hrnn_cell_reference(xv, xk, states, params, rnn_dim)
    for o, r in zip(outs, refs):
        assert o.shape == r.shape and o.dtype == r.dtype
        assert jnp.allclose(o, r, atol=1e-5, rtol=1e-5), "mismatch vs reference"

    print("KERNEL_OK")
</pallas_src>

<mosaic_0001>
module attributes {stable_mosaic.version = 11 : i64} {
  func.func @hrnn_cell_kernel(%arg0: memref<8x28xf32, #tpu.memory_space<vmem>>, %arg1: memref<8x160xf32, #tpu.memory_space<vmem>>, %arg2: memref<80x64xf32, #tpu.memory_space<vmem>>, %arg3: memref<1x64xf32, #tpu.memory_space<vmem>>, %arg4: memref<16x64xf32, #tpu.memory_space<vmem>>, %arg5: memref<1x64xf32, #tpu.memory_space<vmem>>, %arg6: memref<28x256xf32, #tpu.memory_space<vmem>>, %arg7: memref<64x256xf32, #tpu.memory_space<vmem>>, %arg8: memref<1x256xf32, #tpu.memory_space<vmem>>, %arg9: memref<8x160xf32, #tpu.memory_space<vmem>>) attributes {dimension_semantics = [], scalar_prefetch = 0 : i64, scratch_operands = 0 : i64, tpu.core_type = #tpu.core_type<tc>} {
    %c0 = arith.constant 0 : index
    %c0_0 = arith.constant 0 : index
    %0 = vector.load %arg1[%c0, %c0_0] : memref<8x160xf32, #tpu.memory_space<vmem>>, vector<8x160xf32>
    %1 = vector.extract_strided_slice %0 {offsets = [0, 0], sizes = [8, 80], strides = [1, 1]} : vector<8x160xf32> to vector<8x80xf32>
    %2 = vector.extract_strided_slice %0 {offsets = [0, 80], sizes = [8, 64], strides = [1, 1]} : vector<8x160xf32> to vector<8x64xf32>
    %3 = vector.extract_strided_slice %0 {offsets = [0, 144], sizes = [8, 16], strides = [1, 1]} : vector<8x160xf32> to vector<8x16xf32>
    %c0_1 = arith.constant 0 : index
    %c0_2 = arith.constant 0 : index
    %4 = vector.load %arg2[%c0_1, %c0_2] : memref<80x64xf32, #tpu.memory_space<vmem>>, vector<80x64xf32>
    %cst = arith.constant dense<0.000000e+00> : vector<8x64xf32>
    %5 = tpu.matmul %1, %4, %cst {dimension_numbers = #tpu.dot_dimension_numbers<[1], [0], [0], [1], [0, 0, 1, 1], [], []>} : vector<8x80xf32>, vector<80x64xf32>, vector<8x64xf32> -> vector<8x64xf32>
    %c0_3 = arith.constant 0 : index
    %c0_4 = arith.constant 0 : index
    %6 = vector.load %arg3[%c0_3, %c0_4] : memref<1x64xf32, #tpu.memory_space<vmem>>, vector<1x64xf32>
    %7 = vector.broadcast %6 : vector<1x64xf32> to vector<8x64xf32>
    %8 = arith.addf %5, %7 : vector<8x64xf32>
    %9 = vector.extract_strided_slice %8 {offsets = [0, 0], sizes = [8, 16], strides = [1, 1]} : vector<8x64xf32> to vector<8x16xf32>
    %10 = arith.negf %9 : vector<8x16xf32>
    %11 = math.exp %10 : vector<8x16xf32>
    %cst_5 = arith.constant 1.000000e+00 : f32
    %12 = vector.broadcast %cst_5 : f32 to vector<8x16xf32>
    %13 = arith.addf %12, %11 : vector<8x16xf32>
    %14 = arith.divf %12, %13 : vector<8x16xf32>
    %15 = vector.extract_strided_slice %8 {offsets = [0, 16], sizes = [8, 16], strides = [1, 1]} : vector<8x64xf32> to vector<8x16xf32>
    %16 = arith.negf %15 : vector<8x16xf32>
    %17 = math.exp %16 : vector<8x16xf32>
    %cst_6 = arith.constant 1.000000e+00 : f32
    %18 = vector.broadcast %cst_6 : f32 to vector<8x16xf32>
    %19 = arith.addf %18, %17 : vector<8x16xf32>
    %20 = arith.divf %18, %19 : vector<8x16xf32>
    %21 = vector.extract_strided_slice %8 {offsets = [0, 32], sizes = [8, 16], strides = [1, 1]} : vector<8x64xf32> to vector<8x16xf32>
    %22 = math.tanh %21 : vector<8x16xf32>
    %23 = vector.extract_strided_slice %8 {offsets = [0, 48], sizes = [8, 16], strides = [1, 1]} : vector<8x64xf32> to vector<8x16xf32>
    %24 = arith.negf %23 : vector<8x16xf32>
    %25 = math.exp %24 : vector<8x16xf32>
    %cst_7 = arith.constant 1.000000e+00 : f32
    %26 = vector.broadcast %cst_7 : f32 to vector<8x16xf32>
    %27 = arith.addf %26, %25 : vector<8x16xf32>
    %28 = arith.divf %26, %27 : vector<8x16xf32>
    %29 = arith.mulf %20, %3 : vector<8x16xf32>
    %30 = arith.mulf %14, %22 : vector<8x16xf32>
    %31 = arith.addf %29, %30 : vector<8x16xf32>
    %32 = math.tanh %31 : vector<8x16xf32>
    %33 = arith.mulf %28, %32 : vector<8x16xf32>
    %c0_8 = arith.constant 0 : index
    %c0_9 = arith.constant 0 : index
    %34 = vector.load %arg4[%c0_8, %c0_9] : memref<16x64xf32, #tpu.memory_space<vmem>>, vector<16x64xf32>
    %cst_10 = arith.constant dense<0.000000e+00> : vector<8x64xf32>
    %35 = tpu.matmul %33, %34, %cst_10 {dimension_numbers = #tpu.dot_dimension_numbers<[1], [0], [0], [1], [0, 0, 1, 1], [], []>} : vector<8x16xf32>, vector<16x64xf32>, vector<8x64xf32> -> vector<8x64xf32>
    %c0_11 = arith.constant 0 : index
    %c0_12 = arith.constant 0 : index
    %36 = vector.load %arg5[%c0_11, %c0_12] : memref<1x64xf32, #tpu.memory_space<vmem>>, vector<1x64xf32>
    %37 = vector.broadcast %36 : vector<1x64xf32> to vector<8x64xf32>
    %38 = arith.addf %35, %37 : vector<8x64xf32>
    %c0_13 = arith.constant 0 : index
    %c0_14 = arith.constant 0 : index
    %39 = vector.load %arg0[%c0_13, %c0_14] : memref<8x28xf32, #tpu.memory_space<vmem>>, vector<8x28xf32>
    %c0_15 = arith.constant 0 : index
    %c0_16 = arith.constant 0 : index
    %40 = vector.load %arg6[%c0_15, %c0_16] : memref<28x256xf32, #tpu.memory_space<vmem>>, vector<28x256xf32>
    %cst_17 = arith.constant dense<0.000000e+00> : vector<8x256xf32>
    %41 = tpu.matmul %39, %40, %cst_17 {dimension_numbers = #tpu.dot_dimension_numbers<[1], [0], [0], [1], [0, 0, 1, 1], [], []>} : vector<8x28xf32>, vector<28x256xf32>, vector<8x256xf32> -> vector<8x256xf32>
    %c0_18 = arith.constant 0 : index
    %c0_19 = arith.constant 0 : index
    %42 = vector.load %arg7[%c0_18, %c0_19] : memref<64x256xf32, #tpu.memory_space<vmem>>, vector<64x256xf32>
    %cst_20 = arith.constant dense<0.000000e+00> : vector<8x256xf32>
    %43 = tpu.matmul %38, %42, %cst_20 {dimension_numbers = #tpu.dot_dimension_numbers<[1], [0], [0], [1], [0, 0, 1, 1], [], []>} : vector<8x64xf32>, vector<64x256xf32>, vector<8x256xf32> -> vector<8x256xf32>
    %44 = arith.addf %41, %43 : vector<8x256xf32>
    %c0_21 = arith.constant 0 : index
    %c0_22 = arith.constant 0 : index
    %45 = vector.load %arg8[%c0_21, %c0_22] : memref<1x256xf32, #tpu.memory_space<vmem>>, vector<1x256xf32>
    %46 = vector.broadcast %45 : vector<1x256xf32> to vector<8x256xf32>
    %47 = arith.addf %44, %46 : vector<8x256xf32>
    %48 = vector.extract_strided_slice %47 {offsets = [0, 0], sizes = [8, 64], strides = [1, 1]} : vector<8x256xf32> to vector<8x64xf32>
    %49 = arith.negf %48 : vector<8x64xf32>
    %50 = math.exp %49 : vector<8x64xf32>
    %cst_23 = arith.constant 1.000000e+00 : f32
    %51 = vector.broadcast %cst_23 : f32 to vector<8x64xf32>
    %52 = arith.addf %51, %50 : vector<8x64xf32>
    %53 = arith.divf %51, %52 : vector<8x64xf32>
    %54 = vector.extract_strided_slice %47 {offsets = [0, 64], sizes = [8, 64], strides = [1, 1]} : vector<8x256xf32> to vector<8x64xf32>
    %55 = arith.negf %54 : vector<8x64xf32>
    %56 = math.exp %55 : vector<8x64xf32>
    %cst_24 = arith.constant 1.000000e+00 : f32
    %57 = vector.broadcast %cst_24 : f32 to vector<8x64xf32>
    %58 = arith.addf %57, %56 : vector<8x64xf32>
    %59 = arith.divf %57, %58 : vector<8x64xf32>
    %60 = vector.extract_strided_slice %47 {offsets = [0, 128], sizes = [8, 64], strides = [1, 1]} : vector<8x256xf32> to vector<8x64xf32>
    %61 = math.tanh %60 : vector<8x64xf32>
    %62 = vector.extract_strided_slice %47 {offsets = [0, 192], sizes = [8, 64], strides = [1, 1]} : vector<8x256xf32> to vector<8x64xf32>
    %63 = arith.negf %62 : vector<8x64xf32>
    %64 = math.exp %63 : vector<8x64xf32>
    %cst_25 = arith.constant 1.000000e+00 : f32
    %65 = vector.broadcast %cst_25 : f32 to vector<8x64xf32>
    %66 = arith.addf %65, %64 : vector<8x64xf32>
    %67 = arith.divf %65, %66 : vector<8x64xf32>
    %68 = arith.mulf %59, %2 : vector<8x64xf32>
    %69 = arith.mulf %53, %61 : vector<8x64xf32>
    %70 = arith.addf %68, %69 : vector<8x64xf32>
    %71 = math.tanh %70 : vector<8x64xf32>
    %72 = arith.mulf %67, %71 : vector<8x64xf32>
    %c0_26 = arith.constant 0 : index
    %c0_27 = arith.constant 0 : index
    %73 = vector.load %arg9[%c0_26, %c0_27] : memref<8x160xf32, #tpu.memory_space<vmem>>, vector<8x64xf32>
    tpu.vector_store %arg9[%c0_26, %c0_27], %72 {strides = array<i32>} : memref<8x160xf32, #tpu.memory_space<vmem>>, vector<8x64xf32>,
    %c0_28 = arith.constant 0 : index
    %c64 = arith.constant 64 : index
    %74 = vector.load %arg9[%c0_28, %c64] : memref<8x160xf32, #tpu.memory_space<vmem>>, vector<8x16xf32>
    tpu.vector_store %arg9[%c0_28, %c64], %33 {strides = array<i32>} : memref<8x160xf32, #tpu.memory_space<vmem>>, vector<8x16xf32>,
    %c0_29 = arith.constant 0 : index
    %c80 = arith.constant 80 : index
    %75 = vector.load %arg9[%c0_29, %c80] : memref<8x160xf32, #tpu.memory_space<vmem>>, vector<8x64xf32>
    tpu.vector_store %arg9[%c0_29, %c80], %70 {strides = array<i32>} : memref<8x160xf32, #tpu.memory_space<vmem>>, vector<8x64xf32>,
    %c0_30 = arith.constant 0 : index
    %c144 = arith.constant 144 : index
    %76 = vector.load %arg9[%c0_30, %c144] : memref<8x160xf32, #tpu.memory_space<vmem>>, vector<8x16xf32>
    tpu.vector_store %arg9[%c0_30, %c144], %31 {strides = array<i32>} : memref<8x160xf32, #tpu.memory_space<vmem>>, vector<8x16xf32>,
    return
  }
}

</mosaic_0001>

<bundles_post_ra>
// kernel: hrnn_cell_step.1
= control target key start
LH: loop header
LB: loop body
LE: loop exit
PB: predicated region body
PF: predicated region fallthrough
CT: control target
= control target key end

     0   :  { %14 = vsyncpa [#allocation3], 0  ;;  %s1053_s0 = inlined_call_operand.hbm [shape: f32[8,28], index: 0, kind: input, shape index: {}]   ;;  %s1054_s1 = inlined_call_operand.vmem [shape: f32[8,160], index: 1, kind: input, shape index: {}]   ;;  %s1055_s2 = inlined_call_operand.vmem [shape: f32[80,64], index: 2, kind: input, shape index: {}]   ;;  %s1056_s3 = inlined_call_operand.hbm [shape: f32[1,64], index: 3, kind: input, shape index: {}]   ;;  %s1057_s4 = inlined_call_operand.vmem [shape: f32[16,64], index: 4, kind: input, shape index: {}]   ;;  %s1058_s5 = inlined_call_operand.hbm [shape: f32[1,64], index: 5, kind: input, shape index: {}]   ;;  %s1059_s6 = inlined_call_operand.hbm [shape: f32[28,256], index: 6, kind: input, shape index: {}]   ;;  %s1060_s7 = inlined_call_operand.vmem [shape: f32[64,256], index: 7, kind: input, shape index: {}]   ;;  %s1061_s8 = inlined_call_operand.vmem [shape: f32[1,256], index: 8, kind: input, shape index: {}]   ;;  %s1062_s9 = inlined_call_operand.hbm [shape: f32[8,160], index: 9, kind: output, shape index: {}]  }
   0x1   :  { %15 = vsyncpa [#allocation6], 0 }
   0x2   :  { %16 = vsyncpa [#allocation9], 0 }
   0x3   :  { %17 = vsyncpa [#allocation4], 0  ;;  %s801_s30 = smov [#allocation5]   ;;  %s802_s11 = smov [#allocation2]  }
   0x4   :  { %s38_s10 = sshll.u32 %s801_s30, 4  ;;  %s24_s12 = sshll.u32 %s802_s11, 4  ;;  %s39_s10 = int_to_ptr.vmem [resolvable:$true] %s38_s10  ;;  %s25_s12 = int_to_ptr.vmem [resolvable:$true] %s24_s12 }
   0x5   :  { %s683_s15 = scalar_lea.hbm %s1056_s3, 16 }
   0x6   :  { %p684_p0 = scmp.ne.s32.totalorder %s1056_s3, %s683_s15  ;;  %p687_p1 = scmp.lt.u32.totalorder %s683_s15, %s1056_s3 }
   0x8   :  { %p689_p2 = pnand %p687_p1, %p684_p0 }
   0xa   :  { %692 = shalt.err (!%p689_p2)
}
   0xb   :  { %s693_s20 = scalar_lea.vmem %s39_s10, 16  ;;  %s697_s21 = scalar_lea.vmem %s39_s10, 32 }
   0xc   :  { %p694_p3 = scmp.ne.s32.totalorder %s39_s10, %s693_s20  ;;  %p698_p4 = scmp.lt.s32.totalorder %s39_s10, %s39_s10 }
   0xd   :  { %p699_p5 = scmp.lt.s32.totalorder %s697_s21, %s693_s20 }
   0xf   :  { %p700_p6 = por %p699_p5, %p698_p4 }
  0x11   :  { %p701_p7 = pnand %p700_p6, %p694_p3 }
  0x13   :  { %704 = shalt.err (!%p701_p7)
}
  0x14   :  { %41 = dma.hbm_to_vmem [thread:$0]  %s1056_s3, 16, %s39_s10, [#allocation6]  }
  0x15   :  { %s705_s26 = scalar_lea.hbm %s1053_s0, 128 }
  0x16   :  { %p706_p8 = scmp.ne.s32.totalorder %s1053_s0, %s705_s26  ;;  %p709_p9 = scmp.lt.u32.totalorder %s705_s26, %s1053_s0 }
  0x18   :  { %p711_p10 = pnand %p709_p9, %p706_p8 }
  0x1a   :  { %714 = shalt.err (!%p711_p10)
}
  0x1b   :  { %s715_s11 = scalar_lea.vmem %s25_s12, 128  ;;  %p720_p12 = scmp.lt.s32.totalorder %s25_s12, %s25_s12 }
  0x1c   :  { %p716_p11 = scmp.ne.s32.totalorder %s25_s12, %s715_s11  ;;  %p721_p13 = scmp.lt.s32.totalorder %s715_s11, %s715_s11 }
  0x1e   :  { %p722_p0 = por %p721_p13, %p720_p12 }
  0x20   :  { %p723_p1 = pnand %p722_p0, %p716_p11 }
  0x22   :  { %726 = shalt.err (!%p723_p1)
}
  0x23   :  { %27 = dma.hbm_to_vmem [thread:$0]  %s1053_s0, 128, %s25_s12, [#allocation3]  }
  0x24   :  { %s803_s13 = smov [#allocation7]   ;;  %s804_s15 = smov [#allocation8]  }
  0x25   :  { %s50_s14 = sshll.u32 %s803_s13, 4  ;;  %s59_s16 = sshll.u32 %s804_s15, 4  ;;  %s51_s14 = int_to_ptr.vmem [resolvable:$true] %s50_s14  ;;  %s891_s16 = int_to_ptr.vmem [resolvable:$true] %s59_s16 }
  0x26   :  { %s727_s19 = scalar_lea.hbm %s1058_s5, 16 }
  0x27   :  { %p728_p2 = scmp.ne.s32.totalorder %s1058_s5, %s727_s19  ;;  %p731_p3 = scmp.lt.u32.totalorder %s727_s19, %s1058_s5 }
  0x29   :  { %p733_p4 = pnand %p731_p3, %p728_p2 }
  0x2b   :  { %736 = shalt.err (!%p733_p4)
}
  0x2c   :  { %s737_s0 = scalar_lea.vmem %s51_s14, 16  ;;  %s741_s12 = scalar_lea.vmem %s51_s14, 32 }
  0x2d   :  { %p738_p5 = scmp.ne.s32.totalorder %s51_s14, %s737_s0  ;;  %p742_p6 = scmp.lt.s32.totalorder %s51_s14, %s51_s14 }
  0x2e   :  { %p743_p7 = scmp.lt.s32.totalorder %s741_s12, %s737_s0 }
  0x30   :  { %p744_p8 = por %p743_p7, %p742_p6 }
  0x32   :  { %p745_p9 = pnand %p744_p8, %p738_p5 }
  0x34   :  { %748 = shalt.err (!%p745_p9)
}
  0x35   :  { %53 = dma.hbm_to_vmem [thread:$0]  %s1058_s5, 16, %s51_s14, [#allocation6]  }
  0x36   :  { %s749_s28 = scalar_lea.hbm %s1059_s6, 1024 }
  0x37   :  { %p750_p10 = scmp.ne.s32.totalorder %s1059_s6, %s749_s28  ;;  %p753_p11 = scmp.lt.u32.totalorder %s749_s28, %s1059_s6 }
  0x39   :  { %p755_p12 = pnand %p753_p11, %p750_p10 }
  0x3b   :  { %758 = shalt.err (!%p755_p12)
}
  0x3c   :  { %s759_s10 = scalar_lea.vmem %s891_s16, 1024  ;;  %p764_p0 = scmp.lt.s32.totalorder %s891_s16, %s891_s16 }
  0x3d   :  { %p760_p13 = scmp.ne.s32.totalorder %s891_s16, %s759_s10  ;;  %p765_p1 = scmp.lt.s32.totalorder %s759_s10, %s759_s10 }
  0x3f   :  { %p766_p2 = por %p765_p1, %p764_p0 }
  0x41   :  { %p767_p3 = pnand %p766_p2, %p760_p13 }
  0x43   :  { %770 = shalt.err (!%p767_p3)
}
  0x44   :  { %s805_s5 = smov 256   ;;  %s806_s13 = smov 16  }
  0x45   :  { %65 = dma.hbm_to_vmem [thread:$0]  %s1059_s6, 1024, %s891_s16, [#allocation9], %s805_s5, %s805_s5, %s806_s13  }
  0x46   :  { %793 = dma.done.wait [#allocation3], 128  }
  0x47   :  { %794 = vsyncadd [#allocation3], 4294967168 }
  0x48   :  { %795 = dma.done.wait [#allocation6], 32  }
  0x49   :  { %796 = vsyncadd [#allocation6], 4294967264 }
  0x4a   :  { %797 = dma.done.wait [#allocation9], 1024  }
  0x4b   :  { %798 = vsyncadd [#allocation9], 4294966272  ;;  %v807_v0 = vmov 0.0|0.0   ;;  %vm808_vm0 = vmmov 0   ;;  %v809_v1 = vmov 0.0   ;;  %v84_v2 = vld [vmem:[%s1055_s2] sm:$0xff] }
  0x4c   :  { %601 = vmatprep.subr.bf16.mxu0 %v807_v0  ;;  %591 = vmatprep.mubr.msk.f32.mxu0 %vm808_vm0, %v809_v1  ;;  %v85_v3 = vld [vmem:[%s1055_s2 + $0x8] sm:$0xff]  ;;  %v86_v4 = vld [vmem:[%s1055_s2 + $0x10] sm:$0xff]  ;;  %v87_v6 = vld [vmem:[%s1055_s2 + $0x18] sm:$0xff]  ;;  %vm101_vm1 = vcmask 654336   ;;  %s811_s19 = smov 32   ;;  %s812_s0 = smov 80  }
  0x4d   :  { %377 = vmatprep.mubr.f32.mxu1 %v809_v1  ;;  %v602_v5 = vpack.c.bf16 %v85_v3, %v84_v2  ;;  %v605_v7 = vpack.c.bf16 %v87_v6, %v86_v4  ;;  %v88_v8 = vld [vmem:[%s1055_s2 + $0x20] sm:$0xff]  ;;  %v89_v9 = vld [vmem:[%s1055_s2 + $0x28] sm:$0xff]  ;;  %v90_v11 = vld [vmem:[%s1055_s2 + $0x30] sm:$0xff]  ;;  %vm211_vm2 = vcmask 130048   ;;  %s813_s12 = smov 112   ;;  %vm388_vm3 = vcmask 1043456  }
  0x4e   :  { %v608_v10 = vpack.c.bf16 %v89_v9, %v88_v8  ;;  %v91_v12 = vld [vmem:[%s1055_s2 + $0x38] sm:$0xff]  ;;  %v92_v14 = vld [vmem:[%s1055_s2 + $0x40] sm:$0xff]  ;;  %v93_v15 = vld [vmem:[%s1055_s2 + $0x48] sm:$0xff]  ;;  %s810_s2 = smov 96   ;;  %vm309_vm4 = vcmask 523264   ;;  %vm814_vm5 = vmmov 1  }
  0x4f   :  { %603 = vmatpush3.bf16.msra.mxu0 %v602_v5  ;;  %v611_v13 = vpack.c.bf16 %v91_v12, %v90_v11  ;;  %v614_v16 = vpack.c.bf16 %v93_v15, %v92_v14  ;;  %v959_v17 = vld [vmem:[%s1054_s1] sm:$0xff]  ;;  %v546_v18 = vld [vmem:[#allocation5] ss:$0 sm:$0xff]  ;;  %v296_v38 = vld [vmem:[%s1060_s7 + $0x18] sm:$0xff]  ;;  %vm384_vm7 = vcmask 228352   ;;  %s815_s24 = smov 64  }
  0x50   :  { %604 = vmatprep.subr.bf16.mxu0 %v807_v0  ;;  %v83_v29 = vld [vmem:[%s1054_s1 + $0x8] sm:$0xff]  ;;  %v199_v33 = vld [vmem:[%s1057_s4] sm:$0xff]  ;;  %v295_v41 = vld [vmem:[%s1060_s7 + $0x10] sm:$0xff]  ;;  %vm498_vm8 = vcmask 916480   ;;  %vm518_vm9 = vcmask 654848   ;;  %vm524_vm10 = vcmask 1048192  }
  0x51   :  { %v200_v34 = vld [vmem:[%s1057_s4 + $0x8] sm:$0xff]  ;;  %v293_v39 = vld [vmem:[%s1060_s7] sm:$0xff]  ;;  %v300_v43 = vld [vmem:[%s1060_s7 + $0x38] sm:$0xff]  ;;  %vm527_vm11 = vcmask 261248  }
  0x52   :  { %v617_v35 = vpack.c.bf16 %v200_v34, %v199_v33  ;;  %v294_v37 = vld [vmem:[%s1060_s7 + $0x8] sm:$0xff]  ;;  %v621_v44 = vpack.c.bf16 %v295_v41, %v293_v39  ;;  %v297_v46 = vld [vmem:[%s1060_s7 + $0x20] sm:$0xff]  ;;  %v299_v47 = vld [vmem:[%s1060_s7 + $0x30] sm:$0xff] }
  0x53   :  { %606 = vmatpush3.bf16.msra.mxu0 %v605_v7  ;;  %v619_v40 = vpack.c.bf16 %v296_v38, %v294_v37  ;;  %v298_v42 = vld [vmem:[%s1060_s7 + $0x28] sm:$0xff]  ;;  %v304_v49 = vld [vmem:[%s1060_s7 + $0x58] sm:$0xff]  ;;  %v625_v50 = vpack.c.bf16 %v299_v47, %v297_v46  ;;  %v301_v52 = vld [vmem:[%s1060_s7 + $0x40] sm:$0xff] }
  0x54   :  { %607 = vmatprep.subr.bf16.mxu0 %v807_v0  ;;  %v623_v45 = vpack.c.bf16 %v300_v43, %v298_v42  ;;  %v302_v48 = vld [vmem:[%s1060_s7 + $0x48] sm:$0xff]  ;;  %v303_v53 = vld [vmem:[%s1060_s7 + $0x50] sm:$0xff]  ;;  %v308_v55 = vld [vmem:[%s1060_s7 + $0x78] sm:$0xff] }
  0x55   :  { %620 = vmatprep.subr.bf16.mxu1 %v619_v40  ;;  %v627_v51 = vpack.c.bf16 %v304_v49, %v302_v48  ;;  %v306_v54 = vld [vmem:[%s1060_s7 + $0x68] sm:$0xff]  ;;  %v629_v56 = vpack.c.bf16 %v303_v53, %v301_v52  ;;  %v305_v58 = vld [vmem:[%s1060_s7 + $0x60] sm:$0xff]  ;;  %v307_v59 = vld [vmem:[%s1060_s7 + $0x70] sm:$0xff] }
  0x56   :  { %622 = vmatpush1.bf16.msra.mxu1 %v621_v44  ;;  %v631_v57 = vpack.c.bf16 %v308_v55, %v306_v54  ;;  %v633_v62 = vpack.c.bf16 %v307_v59, %v305_v58  ;;  %v288_v2 = vld [vmem:[#allocation8 + $0x18] sm:$0xff]  ;;  %v285_v4 = vld [vmem:[#allocation8] sm:$0xff]  ;;  %v287_v5 = vld [vmem:[#allocation8 + $0x10] sm:$0xff] }
  0x57   :  { %609 = vmatpush3.bf16.msra.mxu0 %v608_v10  ;;  %624 = vmatprep.subr.bf16.mxu1 %v623_v45  ;;  %v549_v6 = vld [vmem:[#allocation7] ss:$0 sm:$0xff]  ;;  %v290_v7 = vld [vmem:[#allocation8 + $0x28] sm:$0xff]  ;;  %v292_v8 = vld [vmem:[#allocation8 + $0x38] sm:$0xf]  ;;  %v637_v10 = vpack.c.bf16 %v287_v5, %v285_v4 }
  0x58   :  { %610 = vmatprep.subr.bf16.mxu0 %v807_v0  ;;  %v289_v14 = vld [vmem:[#allocation8 + $0x20] sm:$0xff]  ;;  %v291_v15 = vld [vmem:[#allocation8 + $0x30] sm:$0xf]  ;;  %vm640_vm6 = vmpackc.low %vm388_vm3, %vm814_vm5 }
  0x5a   :  { %626 = vmatpush1.bf16.msra.mxu1 %v625_v50 }
  0x5b   :  { %612 = vmatpush3.bf16.msra.mxu0 %v611_v13  ;;  %628 = vmatprep.subr.bf16.mxu1 %v627_v51  ;;  %v639_v13 = vpack.c.bf16 %v292_v8, %v290_v7 }
  0x5c   :  { %613 = vmatprep.subr.bf16.mxu0 %v807_v0 }
  0x5e   :  { %630 = vmatpush1.bf16.msra.mxu1 %v629_v56 }
  0x5f   :  { %615 = vmatpush3.bf16.msra.mxu0 %v614_v16  ;;  %632 = vmatprep.subr.bf16.mxu1 %v631_v57  ;;  %v642_v16 = vpack.c.bf16 %v291_v15, %v289_v14 }
  0x60   :  { %616 = vmatprep.subr.bf16.mxu0 %v807_v0  ;;  %v286_v0 = vld [vmem:[#allocation8 + $0x8] sm:$0xff] }
  0x61   :  { %v635_v3 = vpack.c.bf16 %v288_v2, %v286_v0 }
  0x62   :  { %592 = vmatmul.mubr.msk.f32.vlgmr.msra.gmra.mrb[0].mxu0 %vm101_vm1, %v959_v17  ;;  %634 = vmatpush1.bf16.msra.mxu1 %v633_v62 }
  0x63   :  { %598 = vmatprep.mubr.msk.f32.mxu0 %vm808_vm0, %v809_v1  ;;  %618 = vmatpush3.bf16.msra.mxu0 %v617_v35 }
  0x64   :  { %636 = vmatprep.subr.bf16.mxu1 %v635_v3 }
 0x135   :  { %v171_v19 = vpop.f32.mrb[0].mxu0 }
 0x136   :  { %v172_v20 = vadd.f32 %v546_v18, %v171_v19  ;;  %v593_v21 = vpop.f32.mrb[1].mxu0  ;;  %v468_v18 = vlaneseq }
 0x137   :  { %v466_v21 = vld [vmem:[%s1061_s8] sm:$0x3]  ;;  %s816_s8 = smov [#allocation10]  }
 0x138   :  { %663 = vtanh.f32 %v172_v20  ;;  %v548_v23 = vmul.f32 -1.442695, %v172_v20  ;;  %v469_v19 = vshrl.u32 %v468_v18, 7  ;;  %s535_s25 = sshll.u32 %s816_s8, 4  ;;  %s536_s25 = int_to_ptr.vmem [resolvable:$true] %s535_s25 }
 0x139   :  { %s771_s26 = scalar_lea.vmem %s536_s25, 256  ;;  %p776_p5 = scmp.lt.s32.totalorder %s536_s25, %s536_s25 }
 0x13a   :  { %665 = vpow2.f32 %v548_v23  ;;  %v470_v20 = vsub.s32 0, %v469_v19  ;;  %p772_p4 = scmp.ne.s32.totalorder %s536_s25, %s771_s26  ;;  %p777_p6 = scmp.lt.s32.totalorder %s771_s26, %s771_s26 }
 0x13c   :  { %p778_p7 = por %p777_p6, %p776_p5 }
 0x13e   :  { %p779_p8 = pnand %p778_p7, %p772_p4 }
 0x142   :  { %v664_v22 = vpop.eup %663 }
 0x143   :  { %184 = vrot.lane.b32.xlu0 %v664_v22, %s810_s2  ;;  %v471_v22 = vrot.slane %v466_v21, %v470_v20 }
 0x144   :  { %v666_v24 = vpop.eup %665 }
 0x145   :  { %v178_v25 = vadd.f32 1.0, %v666_v24 }
 0x147   :  { %667 = vrcp.f32 %v178_v25 }
 0x151   :  { %v668_v26 = vpop.eup %667 }
 0x152   :  { %v182_v30 = vmul.f32 %v668_v26, %v83_v29 }
 0x1b5   :  { %v185_v27 = vpop.permute.xlu0 %184 }
 0x1b6   :  { %v187_v28 = vmul.f32 %v668_v26, %v185_v27  ;;  %v474_v27 = vsub.s32 1, %v469_v19 }
 0x1b8   :  { %189 = vrot.lane.b32.xlu0 %v187_v28, %s806_s13 }
 0x1bc   :  { %494 = vrot.lane.b32.xlu0 %v959_v17, %s813_s12  ;;  %v284_v17 = vld [vmem:[#allocation2] sm:$0xff] }
 0x22a   :  { %v190_v31 = vpop.permute.xlu0 %189 }
 0x22b   :  { %v968_v32 = vadd.f32 %v190_v31, %v182_v30 }
 0x22d   :  { %669 = vtanh.f32 %v968_v32 }
 0x237   :  { %v670_v36 = vpop.eup %669 }
 0x238   :  { %195 = vrot.lane.b32.xlu1 %v670_v36, %s811_s19  ;;  %v495_v36 = vpop.permute.xlu0 %494 }
 0x2aa   :  { %v196_v60 = vpop.permute.xlu1 %195 }
 0x2ab   :  { %v1025_v61 = vmul.f32 %v668_v26, %v196_v60 }
 0x2ad   :  { %209 = vrot.lane.b32.xlu1 %v1025_v61, %s812_s0 }
 0x2b1   :  { %496 = vrot.lane.b32.xlu1 %v83_v29, %s813_s12 }
 0x31f   :  { %v210_v63 = vpop.permute.xlu1 %209 }
 0x320   :  { %599 = vmatmul.mubr.msk.f32.vlgmr.msra.gmra.mrb[2].mxu0 %vm211_vm2, %v210_v63 }
 0x323   :  { %v497_v37 = vpop.permute.xlu1 %496 }
 0x324   :  { %v499_v39 = vsel %vm498_vm8, %v495_v36, %v497_v37 }
 0x3f3   :  { %v280_v9 = vpop.f32.mrb[2].mxu0 }
 0x3f4   :  { %v281_v11 = vadd.f32 %v549_v6, %v280_v9  ;;  %v600_v12 = vpop.f32.mrb[3].mxu0 }
 0x3f6   :  { %551 = vmatmul.mubr.msk.f32.vlgmr.msra.gmra.mrb[0].mxu1 %vm309_vm4, %v281_v11 }
 0x3f7   :  { %638 = vmatpush1.bf16.msra.mxu1 %v637_v10  ;;  %459 = vmatprep.mubr.f32.mxu1 %v809_v1  ;;  %v475_v1 = vrot.slane %v466_v21, %v474_v27 }
 0x3f8   :  { %641 = vmatprep.subr.msk.bf16.mxu1 %vm640_vm6, %v639_v13 }
 0x3fb   :  { %644 = vmatpush1.bf16.msk.msra.mxu1 %vm640_vm6, %v642_v16 }
 0x3fe   :  { %554 = vmatmul.mubr.msk.f32.vlgmr.msra.gmra.mrb[0].mxu1 %vm384_vm7, %v284_v17 }
 0x4d1   :  { %v461_v23 = vpop.f32.mrb[0].mxu1 }
 0x4d2   :  { %v478_v24 = vadd.f32 %v471_v22, %v461_v23  ;;  %v463_v25 = vpop.f32.mrb[1].mxu1 }
 0x4d3   :  { %v479_v28 = vadd.f32 %v475_v1, %v463_v25 }
 0x4d4   :  { %v555_v26 = vmul.f32 -1.442695, %v478_v24 }
 0x4d5   :  { %v556_v35 = vmul.f32 -1.442695, %v479_v28 }
 0x4d6   :  { %671 = vpow2.f32 %v555_v26 }
 0x4d7   :  { %673 = vtanh.f32 %v479_v28 }
 0x4e0   :  { %v672_v29 = vpop.eup %671 }
 0x4e1   :  { %v483_v30 = vadd.f32 1.0, %v672_v29  ;;  %v674_v31 = vpop.eup %673 }
 0x4e3   :  { %675 = vrcp.f32 %v483_v30 }
 0x4e4   :  { %677 = vpow2.f32 %v556_v35 }
 0x4ed   :  { %v676_v33 = vpop.eup %675 }
 0x4ee   :  { %v502_v34 = vmul.f32 %v676_v33, %v674_v31  ;;  %v678_v38 = vpop.eup %677  ;;  %v501_v41 = vmul.f32 %v676_v33, %v499_v39 }
 0x4ef   :  { %v490_v40 = vadd.f32 1.0, %v678_v38 }
 0x4f0   :  { %504 = vrot.lane.b32.xlu0 %v502_v34, %s815_s24 }
 0x4f1   :  { %679 = vrcp.f32 %v490_v40 }
 0x4f4   :  { %515 = vrot.lane.b32.xlu0 %v1025_v61, %s806_s13 }
 0x4fb   :  { %v680_v44 = vpop.eup %679 }
 0x562   :  { %v505_v42 = vpop.permute.xlu0 %504 }
 0x563   :  { %v507_v43 = vadd.f32 %v505_v42, %v501_v41 }
 0x565   :  { %681 = vtanh.f32 %v507_v43 }
 0x566   :  { %v516_v48 = vpop.permute.xlu0 %515 }
 0x56f   :  { %v682_v45 = vpop.eup %681 }
 0x570   :  { %v509_v46 = vmul.f32 %v682_v45, %v680_v44 }
 0x572   :  { %511 = vrot.lane.b32.xlu1 %v509_v46, %s815_s24 }
 0x576   :  { %521 = vrot.lane.b32.xlu1 %v507_v43, %s806_s13 }
 0x5e4   :  { %v512_v47 = vpop.permute.xlu1 %511 }
 0x5e5   :  { %514 = vst.msk [vmem:[#allocation10] sm:$0xff] %vm309_vm4, %v512_v47 }
 0x5e6   :  { %519 = vst.msk [vmem:[#allocation10] sm:$0xff] %vm518_vm9, %v516_v48 }
 0x5e8   :  { %v522_v49 = vpop.permute.xlu1 %521 }
 0x5e9   :  { %526 = vst.msk [vmem:[#allocation10 + $0x8] sm:$0xff] %vm211_vm2, %v522_v49 }
 0x5ea   :  { %525 = vst.msk [vmem:[#allocation10] sm:$0xff] %vm524_vm10, %v522_v49 }
 0x5eb   :  { %528 = vst.msk [vmem:[#allocation10 + $0x8] sm:$0xff] %vm527_vm11, %v968_v32 }
 0x5ec   :  { %782 = shalt.err (!%p779_p8)
}
 0x5ed   :  { %s783_s28 = scalar_lea.hbm %s1062_s9, 256 }
 0x5ee   :  { %p784_p9 = scmp.ne.s32.totalorder %s1062_s9, %s783_s28  ;;  %p787_p10 = scmp.lt.u32.totalorder %s783_s28, %s1062_s9 }
 0x5f0   :  { %p789_p11 = pnand %p787_p10, %p784_p9 }
 0x5f2   :  { %792 = shalt.err (!%p789_p11)
}
 0x5f3   :  { %538 = dma.vmem_to_hbm [thread:$0]  %s536_s25, 256, %s1062_s9, [#allocation4]  }
 0x5f4   :  { %799 = dma.done.wait [#allocation4], 256  }
 0x5f5   :  { %800 = vsyncadd [#allocation4], 4294967040 }
 0x5f6   :  { %542 = vsyncpa [#allocation3], 1 }
 0x5f7   :  { %543 = vsyncpa [#allocation6], 1 }
 0x5f8   :  { %544 = vsyncpa [#allocation9], 1 }
 0x5f9   :  { %545 = vsyncpa [#allocation4], 1 }

</bundles_post_ra>
